<compile_context>
chip_gen: v5e
topology: v5e:2x2
jax: 0.10.0
libtpu: 0.0.40
codegen_flags: <defaults>
</compile_context>

<pallas_src>
import functools
import math

import jax
import jax.numpy as jnp
from jax.experimental import pallas as pl
from jax.experimental.pallas import tpu as pltpu

LANE = 128


def _round_up(n, m):
    return ((n + m - 1) // m) * m


def _mlp_kernel(x_ref, w1_ref, b1_ref, w2_ref, b2_ref, o_ref):
    # fc1: MXU matmul with f32 accumulation; bias add is a full-vreg VPU add
    # (bias lane-padded to 128).
    h = jnp.dot(x_ref[...], w1_ref[...], preferred_element_type=jnp.float32)
    h = h + b1_ref[...]
    # Sigmoid on the f32 accumulator (EUP slot, off the MXU critical path);
    # explicit cast to the matmul compute dtype before the second MXU pass.
    h = jax.nn.sigmoid(h).astype(w2_ref.dtype)
    y = jnp.dot(h, w2_ref[...], preferred_element_type=jnp.float32) + b2_ref[...]
    o_ref[...] = y.astype(o_ref.dtype)


def prepare_params(w1, b1, w2, b2, *, compute_dtype=jnp.bfloat16):
    """One-time parameter prep (call at init, NOT per forward).

    w1: [hidden, in]  (PyTorch fc1.weight layout)   b1: [hidden]
    w2: [out, hidden] (PyTorch fc2.weight layout)   b2: [out]

    Returns (w1_p, b1_p, w2_p, b2_p): weights transposed to [in, out] layout
    and zero-padded to 128-lane multiples, biases as f32 [1, padded] rows.
    """
    hid, in_size = w1.shape
    out_size, hid2 = w2.shape
    assert hid2 == hid
    hid_p = _round_up(hid, LANE)
    out_p = _round_up(out_size, LANE)
    cd = compute_dtype

    w1_p = jnp.zeros((in_size, hid_p), cd).at[:, :hid].set(w1.T.astype(cd))
    # NOTE(correctness): padded hidden lanes produce sigmoid(0 + b1_pad)=0.5;
    # this is cancelled only because b1_p[:, hid:] == 0 AND w2_p[hid:, :] == 0.
    # Both are guaranteed by the jnp.zeros construction below -- keep it that way.
    b1_p = jnp.zeros((1, hid_p), jnp.float32).at[0, :hid].set(b1.astype(jnp.float32))
    w2_p = jnp.zeros((hid_p, out_p), cd).at[:hid, :out_size].set(w2.T.astype(cd))
    b2_p = jnp.zeros((1, out_p), jnp.float32).at[0, :out_size].set(b2.astype(jnp.float32))
    return w1_p, b1_p, w2_p, b2_p


def simple_model_forward(x, w1_p, b1_p, w2_p, b2_p, *, out_size,
                         num_steps=None, max_rows_per_step=1024):
    """Forward pass of SimpleModel using pre-padded params from prepare_params.

    x: [B, in]  (any float dtype; output keeps x.dtype)
    """
    B, in_size = x.shape
    assert w1_p.shape[0] == in_size, "x feature dim must match prepared w1"
    hid_p = w1_p.shape[1]
    out_p = w2_p.shape[1]
    out_dtype = x.dtype
    cd = w1_p.dtype

    # Batch tiling: >=2 balanced steps when the batch is big enough (so the
    # "parallel" axis can shard across v7x's 2 TensorCores), capped at
    # max_rows_per_step rows per step for very large batches. TB must be a
    # multiple of 8 (sublane alignment of the BlockSpec).
    if num_steps is None:
        num_steps = max(2, pl.cdiv(B, max_rows_per_step)) if B >= 16 else 1
    TB = _round_up(pl.cdiv(B, num_steps), 8)
    B_p = num_steps * TB

    # Only batch rows get padded; the feature dim stays at its native width
    # (block minor dim == full array dim, so no 128-lane HBM inflation).
    x_p = x.astype(cd)
    if B_p != B:
        x_p = jnp.zeros((B_p, in_size), cd).at[:B].set(x_p)

    out_padded = pl.pallas_call(
        _mlp_kernel,
        out_shape=jax.ShapeDtypeStruct((B_p, out_p), out_dtype),
        grid_spec=pltpu.PrefetchScalarGridSpec(
            num_scalar_prefetch=0,
            grid=(num_steps,),
            in_specs=[
                # Activations: tiled along batch, native feature width.
                pl.BlockSpec((TB, in_size), lambda i: (i, 0)),
                # Weights/biases: constant block index -> fetched once, resident.
                pl.BlockSpec((in_size, hid_p), lambda i: (0, 0)),
                pl.BlockSpec((1, hid_p), lambda i: (0, 0)),
                pl.BlockSpec((hid_p, out_p), lambda i: (0, 0)),
                pl.BlockSpec((1, out_p), lambda i: (0, 0)),
            ],
            # Lane-dense (128-wide) output slab -> unmasked vector stores.
            out_specs=pl.BlockSpec((TB, out_p), lambda i: (i, 0)),
        ),
        compiler_params=pltpu.CompilerParams(
            # Batch axis is independent -> shardable across TensorCores (v7x).
            dimension_semantics=("parallel",),
            vmem_limit_bytes=16 * 1024 * 1024,
        ),
    )(x_p, w1_p, b1_p, w2_p, b2_p)

    # Slice away batch-row / output-lane padding (skip if the consumer can
    # digest the padded slab).
    return out_padded[:B, :out_size]


def xavier_uniform(key, fan_out, fan_in, dtype=jnp.float32):
    # Matches torch.nn.init.xavier_uniform_ for a [fan_out, fan_in] weight.
    bound = math.sqrt(6.0 / (fan_in + fan_out))
    return jax.random.uniform(key, (fan_out, fan_in), dtype=dtype,
                              minval=-bound, maxval=bound)


def reference_forward(x, w1, b1, w2, b2):
    # Pure-JAX reference mirroring the PyTorch forward (weights as [out, in]).
    h = jax.nn.sigmoid(x @ w1.T + b1)
    return h @ w2.T + b2


if __name__ == "__main__":
    input_size, hidden_size, output_size = 32, 64, 16
    batch = 64  # small, but still gives grid=(2,) so the batch axis really splits

    key = jax.random.PRNGKey(0)
    kx, k1, k2 = jax.random.split(key, 3)

    x = jax.random.normal(kx, (batch, input_size), dtype=jnp.float32)

    # Deterministic parameter init (PyTorch shapes: fc1.weight [hid, in],
    # fc2.weight [out, hid]; biases zero, per nn.init in the module).
    w1 = xavier_uniform(k1, hidden_size, input_size)   # [hid, in]
    b1 = jnp.zeros((hidden_size,), jnp.float32)
    w2 = xavier_uniform(k2, output_size, hidden_size)  # [out, hid]
    b2 = jnp.zeros((output_size,), jnp.float32)

    ref = reference_forward(x, w1, b1, w2, b2)

    fwd = jax.jit(simple_model_forward,
                  static_argnames=("out_size", "num_steps", "max_rows_per_step"))

    # f32 matmul operands: must match the reference tightly.
    params_f32 = prepare_params(w1, b1, w2, b2, compute_dtype=jnp.float32)
    out_f32 = jax.block_until_ready(fwd(x, *params_f32, out_size=output_size))
    assert out_f32.shape == (batch, output_size)
    assert jnp.allclose(out_f32, ref, atol=1e-5, rtol=1e-5), "f32 mismatch vs reference"

    # bf16 matmul operands (default production path), f32 accumulation.
    params_bf16 = prepare_params(w1, b1, w2, b2)  # compute_dtype=bfloat16 default
    out_bf16 = jax.block_until_ready(fwd(x, *params_bf16, out_size=output_size))
    assert out_bf16.shape == (batch, output_size)
    assert jnp.allclose(out_bf16, ref, atol=5e-2, rtol=5e-2), "bf16 mismatch vs reference"

    # Odd batch: exercises row padding and the single-step (grid=(1,)) path.
    x_odd = x[:13]
    out_odd = jax.block_until_ready(fwd(x_odd, *params_f32, out_size=output_size))
    assert out_odd.shape == (13, output_size)
    assert jnp.allclose(out_odd, ref[:13], atol=1e-5, rtol=1e-5), "odd-batch mismatch"

    print("KERNEL_OK")
</pallas_src>

<mosaic_0001>
module attributes {stable_mosaic.version = 11 : i64} {
  func.func @_mlp_kernel(%arg0: i32, %arg1: memref<32x32xf32, #tpu.memory_space<vmem>>, %arg2: memref<32x128xf32, #tpu.memory_space<vmem>>, %arg3: memref<1x128xf32, #tpu.memory_space<vmem>>, %arg4: memref<128x128xf32, #tpu.memory_space<vmem>>, %arg5: memref<1x128xf32, #tpu.memory_space<vmem>>, %arg6: memref<32x128xf32, #tpu.memory_space<vmem>>) attributes {dimension_semantics = [#tpu.dimension_semantics<parallel>], iteration_bounds = array<i64: 2>, scalar_prefetch = 0 : i64, scratch_operands = 0 : i64, tpu.core_type = #tpu.core_type<tc>, window_params = [{transform_indices = @transform_0, window_bounds = array<i64: 32, 32>}, {pipeline_mode = #tpu.pipeline_mode<synchronous>, transform_indices = @transform_1, window_bounds = array<i64: 32, 128>}, {pipeline_mode = #tpu.pipeline_mode<synchronous>, transform_indices = @transform_2, window_bounds = array<i64: 1, 128>}, {pipeline_mode = #tpu.pipeline_mode<synchronous>, transform_indices = @transform_3, window_bounds = array<i64: 128, 128>}, {pipeline_mode = #tpu.pipeline_mode<synchronous>, transform_indices = @transform_4, window_bounds = array<i64: 1, 128>}, {transform_indices = @transform_5, window_bounds = array<i64: 32, 128>}]} {
    %c0 = arith.constant 0 : index
    %c0_0 = arith.constant 0 : index
    %0 = vector.load %arg1[%c0, %c0_0] : memref<32x32xf32, #tpu.memory_space<vmem>>, vector<32x32xf32>
    %c0_1 = arith.constant 0 : index
    %c0_2 = arith.constant 0 : index
    %1 = vector.load %arg2[%c0_1, %c0_2] : memref<32x128xf32, #tpu.memory_space<vmem>>, vector<32x128xf32>
    %cst = arith.constant dense<0.000000e+00> : vector<32x128xf32>
    %2 = tpu.matmul %0, %1, %cst {dimension_numbers = #tpu.dot_dimension_numbers<[1], [0], [0], [1], [0, 0, 1, 1], [], []>} : vector<32x32xf32>, vector<32x128xf32>, vector<32x128xf32> -> vector<32x128xf32>
    %c0_3 = arith.constant 0 : index
    %c0_4 = arith.constant 0 : index
    %3 = vector.load %arg3[%c0_3, %c0_4] : memref<1x128xf32, #tpu.memory_space<vmem>>, vector<1x128xf32>
    %4 = vector.broadcast %3 : vector<1x128xf32> to vector<32x128xf32>
    %5 = arith.addf %2, %4 : vector<32x128xf32>
    %6 = arith.negf %5 : vector<32x128xf32>
    %7 = math.exp %6 : vector<32x128xf32>
    %cst_5 = arith.constant 1.000000e+00 : f32
    %8 = vector.broadcast %cst_5 : f32 to vector<32x128xf32>
    %9 = arith.addf %8, %7 : vector<32x128xf32>
    %10 = arith.divf %8, %9 : vector<32x128xf32>
    %c0_6 = arith.constant 0 : index
    %c0_7 = arith.constant 0 : index
    %11 = vector.load %arg4[%c0_6, %c0_7] : memref<128x128xf32, #tpu.memory_space<vmem>>, vector<128x128xf32>
    %cst_8 = arith.constant dense<0.000000e+00> : vector<32x128xf32>
    %12 = tpu.matmul %10, %11, %cst_8 {dimension_numbers = #tpu.dot_dimension_numbers<[1], [0], [0], [1], [0, 0, 1, 1], [], []>} : vector<32x128xf32>, vector<128x128xf32>, vector<32x128xf32> -> vector<32x128xf32>
    %c0_9 = arith.constant 0 : index
    %c0_10 = arith.constant 0 : index
    %13 = vector.load %arg5[%c0_9, %c0_10] : memref<1x128xf32, #tpu.memory_space<vmem>>, vector<1x128xf32>
    %14 = vector.broadcast %13 : vector<1x128xf32> to vector<32x128xf32>
    %15 = arith.addf %12, %14 : vector<32x128xf32>
    %c0_11 = arith.constant 0 : index
    %c0_12 = arith.constant 0 : index
    %16 = vector.load %arg6[%c0_11, %c0_12] : memref<32x128xf32, #tpu.memory_space<vmem>>, vector<32x128xf32>
    tpu.vector_store %arg6[%c0_11, %c0_12], %15 {strides = array<i32>} : memref<32x128xf32, #tpu.memory_space<vmem>>, vector<32x128xf32>,
    return
  }
  func.func @transform_0(%arg0: i32) -> (i32, i32) {
    %c0_i32 = arith.constant 0 : i32
    %c0_i32_0 = arith.constant 0 : i32
    return %arg0, %c0_i32 : i32, i32
  }
  func.func @transform_1(%arg0: i32) -> (i32, i32) {
    %c0_i32 = arith.constant 0 : i32
    %c0_i32_0 = arith.constant 0 : i32
    %c0_i32_1 = arith.constant 0 : i32
    return %c0_i32, %c0_i32_0 : i32, i32
  }
  func.func @transform_2(%arg0: i32) -> (i32, i32) {
    %c0_i32 = arith.constant 0 : i32
    %c0_i32_0 = arith.constant 0 : i32
    %c0_i32_1 = arith.constant 0 : i32
    return %c0_i32, %c0_i32_0 : i32, i32
  }
  func.func @transform_3(%arg0: i32) -> (i32, i32) {
    %c0_i32 = arith.constant 0 : i32
    %c0_i32_0 = arith.constant 0 : i32
    %c0_i32_1 = arith.constant 0 : i32
    return %c0_i32, %c0_i32_0 : i32, i32
  }
  func.func @transform_4(%arg0: i32) -> (i32, i32) {
    %c0_i32 = arith.constant 0 : i32
    %c0_i32_0 = arith.constant 0 : i32
    %c0_i32_1 = arith.constant 0 : i32
    return %c0_i32, %c0_i32_0 : i32, i32
  }
  func.func @transform_5(%arg0: i32) -> (i32, i32) {
    %c0_i32 = arith.constant 0 : i32
    %c0_i32_0 = arith.constant 0 : i32
    return %arg0, %c0_i32 : i32, i32
  }
}

</mosaic_0001>

<bundles_post_ra>
// kernel: simple_model_forward.1
= control target key start
LH: loop header
LB: loop body
LE: loop exit
PB: predicated region body
PF: predicated region fallthrough
CT: control target
= control target key end

     0   :  { %10 = vsyncpa [#allocation3], 0  ;;  %s663_s18 = smov 0   ;;  %s708_s0 = inlined_call_operand.vmem [shape: f32[64,32], index: 0, kind: input, shape index: {}]   ;;  %s709_s1 = inlined_call_operand.vmem [shape: f32[32,128], index: 1, kind: input, shape index: {}]   ;;  %s710_s2 = inlined_call_operand.vmem [shape: f32[1,128], index: 2, kind: input, shape index: {}]   ;;  %s711_s3 = inlined_call_operand.hbm [shape: f32[128,128], index: 3, kind: input, shape index: {}]   ;;  %s712_s4 = inlined_call_operand.vmem [shape: f32[1,128], index: 4, kind: input, shape index: {}]   ;;  %s713_s5 = inlined_call_operand.vmem [shape: f32[64,128], index: 5, kind: output, shape index: {}]  }
   0x1 LB: > { %s174_s21 = sshll.u32 %s711_s3, 4  ;;  %s496_s22 = sadd.s32 4294967295, %s628_s18   ;;  %s628_s18 = sphi %s663_s18, %s16_s18   ;;  %s175_s21 = int_to_ptr.hbm [resolvable:$true] %s174_s21 }
   0x2   : > { %p498_p0 = scmp.ge.s32.totalorder %s628_s18, 1  ;;  %p157_p1 = scmp.lt.s32.totalorder %s628_s18, 3 }
   0x3   : > { %p557_p2 = scmp.eq.s32.totalorder %s496_s22, 0  ;;  %s630_s23 = smov [#allocation2]  }
   0x4   : > { %p158_p3 = pnand %p498_p0, %p157_p1  ;;  %s176_s24 = sshll.u32 %s630_s23, 4  ;;  %s177_s24 = int_to_ptr.vmem [resolvable:$true] %s176_s24 }
   0x5   : > { %s631_s25 = smov 128   ;;  %s632_s26 = smov 8  }
   0x6   : > { %p553_p4 = pneg %p158_p3  ;;  %204 = sbr.rel (%p158_p3) target bundleno = 335 (0x14f), region = 40 }
   0x8   : > { %p554_p5 = pnand %p557_p2, %p553_p4 }
   0xa   : > { %556 = dma.hbm_to_vmem [thread:$0]  (!%p554_p5), %s175_s21, 2048, %s177_s24, [#allocation3], %s631_s25, %s631_s25, %s632_s26  }
   0xb   : > { %623 = dma.done.wait (%p557_p2), [#allocation3], 2048  }
   0xc   : > { %625 = vsyncadd (%p557_p2), [#allocation3], 4294965248  ;;  %s503_s27 = sshll.u32 %s496_s22, 2  ;;  %v252_v0 = vld [vmem:[%s709_s1 + $0x18] sm:$0xff]  ;;  %v251_v1 = vld [vmem:[%s709_s1 + $0x10] sm:$0xff]  ;;  %vm257_vm0 = vcmask 261120  }
   0xd   : > { %p234_p6 = scmp.lt.s32.totalorder %s503_s27, 7  ;;  %282 = vmatpush.msra.mxu0 %v252_v0  ;;  %v250_v2 = vld [vmem:[%s709_s1 + $0x8] sm:$0xff]  ;;  %v249_v3 = vld [vmem:[%s709_s1] sm:$0xff]  ;;  %v390_v8 = vld [vmem:[#allocation2 + $0x78] sm:$0xff] }
   0xe   : > { %395 = vmatpush.msra.mxu1 %v390_v8  ;;  %517 = vmatpush.msra.mxu2 %v390_v8  ;;  %v389_v9 = vld [vmem:[#allocation2 + $0x70] sm:$0xff]  ;;  %v388_v10 = vld [vmem:[#allocation2 + $0x68] sm:$0xff]  ;;  %v387_v11 = vld [vmem:[#allocation2 + $0x60] sm:$0xff] }
   0xf   : > { %s715_s27 = smov (!%p234_p6, %s503_s27), 7  ;;  %283 = vmatpush.msra.mxu0 %v251_v1  ;;  %518 = vmatpush.msra.mxu3 %v390_v8  ;;  %v386_v12 = vld [vmem:[#allocation2 + $0x58] sm:$0xff]  ;;  %v385_v13 = vld [vmem:[#allocation2 + $0x50] sm:$0xff]  ;;  %v384_v14 = vld [vmem:[#allocation2 + $0x48] sm:$0xff] }
  0x10   : > { %s504_s28 = sshll.u32 %s715_s27, 3  ;;  %396 = vmatpush.msra.mxu1 %v389_v9  ;;  %519 = vmatpush.msra.mxu2 %v389_v9  ;;  %v383_v15 = vld [vmem:[#allocation2 + $0x40] sm:$0xff]  ;;  %v382_v16 = vld [vmem:[#allocation2 + $0x38] sm:$0xff]  ;;  %v381_v17 = vld [vmem:[#allocation2 + $0x30] sm:$0xff] }
  0x11   : > { %s237_s12 = scalar_lea.vmem %s708_s0, %s504_s28  ;;  %284 = vmatpush.msra.mxu0 %v250_v2  ;;  %520 = vmatpush.msra.mxu3 %v389_v9  ;;  %v380_v18 = vld [vmem:[#allocation2 + $0x28] sm:$0xff]  ;;  %v379_v19 = vld [vmem:[#allocation2 + $0x20] sm:$0xff]  ;;  %v378_v20 = vld [vmem:[#allocation2 + $0x18] sm:$0xff]  ;;  %s243_s22 = scalar_lea.vmem %s713_s5, %s504_s28 }
  0x12   : > { %v245_v4 = vld [vmem:[%s237_s12] sm:$0xff]  ;;  %v246_v5 = vld [vmem:[%s237_s12 + $0x8] sm:$0xff]  ;;  %v247_v6 = vld [vmem:[%s237_s12 + $0x10] sm:$0xff]  ;;  %397 = vmatpush.msra.mxu1 %v388_v10  ;;  %521 = vmatpush.msra.mxu2 %v388_v10 }
  0x13   : > { %285 = vmatpush.msra.mxu0 %v249_v3  ;;  %v248_v7 = vld [vmem:[%s237_s12 + $0x18] sm:$0xff]  ;;  %522 = vmatpush.msra.mxu3 %v388_v10  ;;  %v377_v21 = vld [vmem:[#allocation2 + $0x10] sm:$0xff]  ;;  %v376_v22 = vld [vmem:[#allocation2 + $0x8] sm:$0xff] }
  0x14   : > { %507 = vmatmul.msk.f32.vlgmr.msra.gmra.mxu0 %vm257_vm0, %v245_v4  ;;  %398 = vmatpush.msra.mxu1 %v387_v11  ;;  %v570_v23 = vld [vmem:[%s710_s2] ss:$0 sm:$0xff] }
  0x15   : > { %523 = vmatpush.msra.mxu2 %v387_v11  ;;  %524 = vmatpush.msra.mxu3 %v387_v11  ;;  %v375_v24 = vld [vmem:[#allocation2] sm:$0xff] }
  0x16   : > { %399 = vmatpush.msra.mxu1 %v386_v12 }
  0x17   : > { %525 = vmatpush.msra.mxu2 %v386_v12  ;;  %526 = vmatpush.msra.mxu3 %v386_v12 }
  0x18   : > { %400 = vmatpush.msra.mxu1 %v385_v13 }
  0x19   : > { %527 = vmatpush.msra.mxu2 %v385_v13  ;;  %528 = vmatpush.msra.mxu3 %v385_v13 }
  0x1a   : > { %401 = vmatpush.msra.mxu1 %v384_v14 }
  0x1b   : > { %529 = vmatpush.msra.mxu2 %v384_v14  ;;  %530 = vmatpush.msra.mxu3 %v384_v14 }
  0x1c   : > { %508 = vmatmul.msk.f32.gmra.mxu0 %vm257_vm0, %v246_v5  ;;  %402 = vmatpush.msra.mxu1 %v383_v15 }
  0x1d   : > { %531 = vmatpush.msra.mxu2 %v383_v15  ;;  %532 = vmatpush.msra.mxu3 %v383_v15 }
  0x1e   : > { %403 = vmatpush.msra.mxu1 %v382_v16 }
  0x1f   : > { %533 = vmatpush.msra.mxu2 %v382_v16  ;;  %534 = vmatpush.msra.mxu3 %v382_v16 }
  0x20   : > { %404 = vmatpush.msra.mxu1 %v381_v17 }
  0x21   : > { %535 = vmatpush.msra.mxu2 %v381_v17  ;;  %536 = vmatpush.msra.mxu3 %v381_v17 }
  0x22   : > { %405 = vmatpush.msra.mxu1 %v380_v18 }
  0x23   : > { %537 = vmatpush.msra.mxu2 %v380_v18  ;;  %538 = vmatpush.msra.mxu3 %v380_v18 }
  0x24   : > { %509 = vmatmul.msk.f32.gmra.mxu0 %vm257_vm0, %v247_v6  ;;  %406 = vmatpush.msra.mxu1 %v379_v19 }
  0x25   : > { %539 = vmatpush.msra.mxu2 %v379_v19  ;;  %540 = vmatpush.msra.mxu3 %v379_v19 }
  0x26   : > { %407 = vmatpush.msra.mxu1 %v378_v20 }
  0x27   : > { %541 = vmatpush.msra.mxu2 %v378_v20  ;;  %542 = vmatpush.msra.mxu3 %v378_v20 }
  0x28   : > { %408 = vmatpush.msra.mxu1 %v377_v21 }
  0x29   : > { %543 = vmatpush.msra.mxu2 %v377_v21  ;;  %544 = vmatpush.msra.mxu3 %v377_v21  ;;  %v571_v21 = vld [vmem:[%s712_s4] ss:$0 sm:$0xff] }
  0x2a   : > { %409 = vmatpush.msra.mxu1 %v376_v22 }
  0x2b   : > { %545 = vmatpush.msra.mxu2 %v376_v22  ;;  %546 = vmatpush.msra.mxu3 %v376_v22 }
  0x2c   : > { %510 = vmatmul.msk.f32.gmra.mxu0 %vm257_vm0, %v248_v7  ;;  %410 = vmatpush.msra.mxu1 %v375_v24 }
  0x2d   : > { %547 = vmatpush.msra.mxu2 %v375_v24  ;;  %548 = vmatpush.msra.mxu3 %v375_v24 }
  0x91   : > { %v287_v25 = vpop.f32.mrf.mxu0 }
  0x92   : > { %v288_v26 = vadd.f32 %v570_v23, %v287_v25 }
  0x94   : > { %v511_v27 = vmul.f32 -1.442695, %v288_v26 }
  0x96   : > { %572 = vpow2.f32 %v511_v27 }
  0x99   : > { %v290_v28 = vpop.f32.mrf.mxu0 }
  0x9a   : > { %v291_v29 = vadd.f32 %v570_v23, %v290_v28 }
  0x9c   : > { %v573_v30 = vpop.eup %572  ;;  %v512_v31 = vmul.f32 -1.442695, %v291_v29 }
  0x9d   : > { %v311_v32 = vadd.f32 1.0, %v573_v30 }
  0x9e   : > { %574 = vpow2.f32 %v512_v31 }
  0x9f   : > { %576 = vrcp.f32 %v311_v32  ;;  %v326_v42 = vand.u32 2147483648, %v311_v32  ;;  %v324_v45 = vand.u32 2147483647, %v311_v32  ;;  %vm320_vm2 = vweird.f32 %v311_v32 }
  0xa1   : > { %v293_v33 = vpop.f32.mrf.mxu0  ;;  %v327_v51 = vor.u32 1.1754944e-38, %v326_v42  ;;  %vm325_vm4 = vcmp.eq.f32.partialorder %v324_v45, 8.507059e+37 }
  0xa2   : > { %v294_v34 = vadd.f32 %v570_v23, %v293_v33 }
  0xa4   : > { %v575_v35 = vpop.eup %574  ;;  %v513_v36 = vmul.f32 -1.442695, %v294_v34 }
  0xa5   : > { %v577_v37 = vpop.eup %576  ;;  %v312_v38 = vadd.f32 1.0, %v575_v35 }
  0xa6   : > { %578 = vpow2.f32 %v513_v36  ;;  %v316_v39 = vmul.f32 %v577_v37, %v311_v32  ;;  %vm321_vm1 = vweird.f32 %v577_v37 }
  0xa7   : > { %580 = vrcp.f32 %v312_v38  ;;  %vm322_vm3 = vmor %vm320_vm2, %vm321_vm1  ;;  %v341_v56 = vand.u32 2147483648, %v312_v38  ;;  %v339_v58 = vand.u32 2147483647, %v312_v38  ;;  %vm335_vm6 = vweird.f32 %v312_v38 }
  0xa8   : > { %v317_v40 = vsub.f32 1.0, %v316_v39 }
  0xa9   : > { %v296_v41 = vpop.f32.mrf.mxu0  ;;  %v342_v63 = vor.u32 1.1754944e-38, %v341_v56  ;;  %vm340_vm8 = vcmp.eq.f32.partialorder %v339_v58, 8.507059e+37 }
  0xaa   : > { %v297_v43 = vadd.f32 %v570_v23, %v296_v41  ;;  %v318_v44 = vmul.f32 %v577_v37, %v317_v40 }
  0xac   : > { %v579_v46 = vpop.eup %578  ;;  %v514_v47 = vmul.f32 -1.442695, %v297_v43  ;;  %v319_v48 = vadd.f32 %v577_v37, %v318_v44 }
  0xad   : > { %v581_v49 = vpop.eup %580  ;;  %v313_v50 = vadd.f32 1.0, %v579_v46 }
  0xae   : > { %582 = vpow2.f32 %v514_v47  ;;  %v323_v52 = vsel %vm322_vm3, %v577_v37, %v319_v48  ;;  %v331_v53 = vmul.f32 %v581_v49, %v312_v38  ;;  %vm336_vm5 = vweird.f32 %v581_v49 }
  0xaf   : > { %584 = vrcp.f32 %v313_v50  ;;  %v328_v54 = vsel %vm325_vm4, %v327_v51, %v323_v52  ;;  %vm337_vm7 = vmor %vm335_vm6, %vm336_vm5  ;;  %v356_v4 = vand.u32 2147483648, %v313_v50  ;;  %v354_v6 = vand.u32 2147483647, %v313_v50 }
  0xb0   : > { %411 = vmatmul.f32.vlgmr.msra.gmra.mxu1 %v328_v54  ;;  %v332_v55 = vsub.f32 1.0, %v331_v53  ;;  %vm350_vm10 = vweird.f32 %v313_v50 }
  0xb1   : > { %v357_v9 = vor.u32 1.1754944e-38, %v356_v4  ;;  %vm355_vm12 = vcmp.eq.f32.partialorder %v354_v6, 8.507059e+37 }
  0xb2   : > { %v333_v57 = vmul.f32 %v581_v49, %v332_v55 }
  0xb4   : > { %v583_v59 = vpop.eup %582  ;;  %v334_v60 = vadd.f32 %v581_v49, %v333_v57 }
  0xb5   : > { %v585_v61 = vpop.eup %584  ;;  %v314_v62 = vadd.f32 1.0, %v583_v59 }
  0xb6   : > { %v338_v0 = vsel %vm337_vm7, %v581_v49, %v334_v60  ;;  %v346_v1 = vmul.f32 %v585_v61, %v313_v50  ;;  %vm351_vm9 = vweird.f32 %v585_v61 }
  0xb7   : > { %586 = vrcp.f32 %v314_v62  ;;  %v343_v2 = vsel %vm340_vm8, %v342_v63, %v338_v0  ;;  %vm352_vm11 = vmor %vm350_vm10, %vm351_vm9  ;;  %v371_v14 = vand.u32 2147483648, %v314_v62  ;;  %v369_v16 = vand.u32 2147483647, %v314_v62 }
  0xb8   : > { %414 = vmatmul.f32.vlgmr.msra.gmra.mxu2 %v343_v2  ;;  %v347_v3 = vsub.f32 1.0, %v346_v1  ;;  %vm365_vm14 = vweird.f32 %v314_v62 }
  0xb9   : > { %v372_v18 = vor.u32 1.1754944e-38, %v371_v14  ;;  %vm370_vm0 = vcmp.eq.f32.partialorder %v369_v16, 8.507059e+37 }
  0xba   : > { %v348_v5 = vmul.f32 %v585_v61, %v347_v3 }
  0xbc   : > { %v349_v7 = vadd.f32 %v585_v61, %v348_v5 }
  0xbd   : > { %v587_v8 = vpop.eup %586 }
  0xbe   : > { %v353_v10 = vsel %vm352_vm11, %v585_v61, %v349_v7  ;;  %v361_v11 = vmul.f32 %v587_v8, %v314_v62  ;;  %vm366_vm13 = vweird.f32 %v587_v8 }
  0xbf   : > { %v358_v12 = vsel %vm355_vm12, %v357_v9, %v353_v10  ;;  %vm367_vm15 = vmor %vm365_vm14, %vm366_vm13 }
  0xc0   : > { %417 = vmatmul.f32.vlgmr.msra.gmra.mxu3 %v358_v12  ;;  %v362_v13 = vsub.f32 1.0, %v361_v11 }
  0xc2   : > { %v363_v15 = vmul.f32 %v587_v8, %v362_v13 }
  0xc4   : > { %v364_v17 = vadd.f32 %v587_v8, %v363_v15 }
  0xc6   : > { %v368_v19 = vsel %vm367_vm15, %v587_v8, %v364_v17 }
  0xc7   : > { %v373_v20 = vsel %vm370_vm0, %v372_v18, %v368_v19 }
  0xc8   : > { %420 = vmatmul.f32.gmra.mxu3 %v373_v20 }
 0x12d   : > { %v412_v22 = vpop.f32.mrf.mxu1 }
 0x12e   : > { %v413_v23 = vadd.f32 %v571_v21, %v412_v22 }
 0x130   : > { %424 = vst [vmem:[%s243_s22] sm:$0xff] %v413_v23 }
 0x13b   : > { %v415_v24 = vpop.f32.mrf.mxu2 }
 0x13c   : > { %v416_v25 = vadd.f32 %v571_v21, %v415_v24 }
 0x13e   : > { %425 = vst [vmem:[%s243_s22 + $0x8] sm:$0xff] %v416_v25 }
 0x143   : > { %v418_v26 = vpop.f32.mrf.mxu3 }
 0x144   : > { %v419_v27 = vadd.f32 %v571_v21, %v418_v26 }
 0x146   : > { %426 = vst [vmem:[%s243_s22 + $0x10] sm:$0xff] %v419_v27 }
 0x14b   : > { %v421_v28 = vpop.f32.mrf.mxu3 }
 0x14c   : > { %v422_v29 = vadd.f32 %v571_v21, %v421_v28 }
 0x14e   : > { %427 = vst [vmem:[%s243_s22 + $0x18] sm:$0xff] %v422_v29 }
 0x14f PF: > { %s16_s18 = sadd.s32 1, %s628_s18  }
 0x150   : > { %p13_p7 = scmp.ge.s32.totalorder %s16_s18, 4  }
 0x152   :  { %15 = sbr.rel (!%p13_p7) target bundleno = 1 (0x1), region = 75 }
 0x157   :  { %450 = vsyncpa [#allocation3], 1 }
 0x158   :  { %452 = vsyncpa [#allocation3 + $0x1], 1 }

</bundles_post_ra>
